<compile_context>
chip_gen: v6e
topology: v6e:2x2x1
jax: 0.10.0
libtpu: 0.0.40
codegen_flags: <defaults>
</compile_context>

<pallas_src>
import functools

import jax
import jax.numpy as jnp
from jax.experimental import pallas as pl
from jax.experimental.pallas import tpu as pltpu

_LANE = 128
_ROW_ALIGN = 16                              # sublane granularity (bf16-friendly)
_MAX_TILE_N = 1024                           # upper bound on rows per grid step
_MAX_TILE_K = 1024                           # lanes per output tile (classes)
_MAX_TILE_C = 2048                           # reduction tile when C must be tiled
_MAX_CENTROID_BLOCK_BYTES = 8 * 1024 * 1024  # keep centroids un-tiled below this
_SPLIT_ROWS = 512                            # split N into >=2 row tiles past this


def _round_up(x: int, m: int) -> int:
    return ((x + m - 1) // m) * m


def _cdiv(a: int, b: int) -> int:
    return (a + b - 1) // b


def _vmem_budget_bytes() -> int:
    """~75% of the chip's physical VMEM (128 MiB on v5e/v6e, 64 MiB on v7x)."""
    cap = 64 * 1024 * 1024
    try:
        cap = int(getattr(pltpu.get_tpu_info(), "vmem_capacity_bytes", cap))
    except Exception:  # not on TPU / older jax: keep the conservative default
        pass
    return max(32 * 1024 * 1024, (cap * 3) // 4)


def _centroid_kernel_single(x_ref, c_ref, o_ref, *, compute_dtype):
    """grid = (row tiles, class tiles); whole C reduced in one MXU pass, no scratch."""
    x = x_ref[...]
    if x.dtype != compute_dtype:
        x = x.astype(compute_dtype)          # VPU cast hides under the x-tile DMA
    o_ref[...] = jnp.dot(x, c_ref[...],
                         preferred_element_type=jnp.float32).astype(o_ref.dtype)


def _centroid_kernel_reduce(x_ref, c_ref, o_ref, acc_ref, *, compute_dtype):
    """grid = (row tiles, class tiles, C tiles); f32 accumulator across the C axis."""
    c_step = pl.program_id(2)

    @pl.when(c_step == 0)
    def _():
        acc_ref[...] = jnp.zeros_like(acc_ref)

    x = x_ref[...]
    if x.dtype != compute_dtype:
        x = x.astype(compute_dtype)
    acc_ref[...] += jnp.dot(x, c_ref[...], preferred_element_type=jnp.float32)

    @pl.when(c_step == pl.num_programs(2) - 1)
    def _():
        o_ref[...] = acc_ref[...].astype(o_ref.dtype)


@functools.partial(jax.jit, static_argnames=("compute_dtype",))
def centroid_forward(inputs: jax.Array, centroids: jax.Array, *,
                     compute_dtype=jnp.bfloat16) -> jax.Array:
    """Pallas forward: outputs = inputs @ centroids.T.

    inputs:    (N, C) float32
    centroids: (K, C) float32 (already L2-normalized along C)
    returns:   (N, K) float32
    """
    N, C = inputs.shape
    K, C2 = centroids.shape
    if C != C2:
        raise ValueError("feature dims of inputs and centroids must match")

    cdt = jnp.dtype(compute_dtype)
    x_bpe = inputs.dtype.itemsize
    out_bpe = 4
    budget = _vmem_budget_bytes()

    # ---- class (lane) tiling: lane-dense output stores, K tiled for large class counts ----
    k_pad = _round_up(max(K, 1), _LANE)
    tile_k = min(k_pad, _MAX_TILE_K)
    k_grid = _cdiv(k_pad, tile_k)

    # ---- reduction (C) tiling: keep centroids resident whenever they fit a few MiB --------
    if C * tile_k * cdt.itemsize <= _MAX_CENTROID_BLOCK_BYTES:
        tile_c, c_grid = C, 1
    else:
        tile_c = min(_MAX_TILE_C, _round_up(C, _LANE))
        c_grid = _cdiv(C, tile_c)
    c_pad = tile_c * c_grid

    # ---- row (sublane) tiling, sized from the per-chip VMEM budget -------------------------
    fixed = 2 * tile_c * tile_k * cdt.itemsize                     # centroid double buffer
    per_row = (2 * tile_c * x_bpe                                  # x double buffer (f32)
               + 2 * tile_k * out_bpe                              # output double buffer
               + (tile_k * 4 if c_grid > 1 else 0))                # f32 accumulator scratch
    tile_n_cap = max(_ROW_ALIGN,
                     min(_MAX_TILE_N,
                         ((budget - fixed) // per_row) // _ROW_ALIGN * _ROW_ALIGN))

    n_split = _cdiv(N, tile_n_cap)
    if n_split == 1 and N >= _SPLIT_ROWS:
        n_split = 2                               # >=2 row tiles feeds both TCs on v7x
    tile_n = _round_up(_cdiv(N, n_split), _ROW_ALIGN)
    if tile_n >= N:
        tile_n = N                                # single full-extent row block (always legal)
    n_grid = _cdiv(N, tile_n)

    # ---- operand prep (centroids only; x streams straight from HBM) ------------------------
    c_t = centroids.T.astype(cdt)                 # (C, K)
    if k_pad != K:
        c_t = jnp.pad(c_t, ((0, 0), (0, k_pad - K)))
    x = inputs
    if c_pad != C:
        # Rare huge-C path: zero-pad the reduction axis so partial C tiles stay exact.
        # TODO(synk): fuse this pad into the pallas_call input DMA (allow_input_fusion).
        x = jnp.pad(x, ((0, 0), (0, c_pad - C)))
        c_t = jnp.pad(c_t, ((0, c_pad - C), (0, 0)))

    # ---- advisory cost estimate (counts re-streamed operands) ------------------------------
    x_streams = k_grid if c_grid > 1 else 1       # x re-fetched per K tile only when C tiled
    c_streams = n_grid if (k_grid > 1 or c_grid > 1) else 1
    cost = pl.CostEstimate(
        flops=2 * N * k_pad * c_pad,
        transcendentals=0,
        bytes_accessed=(x_streams * N * c_pad * x_bpe
                        + c_streams * c_pad * k_pad * cdt.itemsize
                        + N * k_pad * out_bpe),
    )

    if c_grid == 1:
        grid = (n_grid, k_grid)
        in_specs = [
            pl.BlockSpec((tile_n, tile_c), lambda i, j: (i, 0)),
            pl.BlockSpec((tile_c, tile_k), lambda i, j: (0, j)),
        ]
        out_specs = pl.BlockSpec((tile_n, tile_k), lambda i, j: (i, j))
        scratch_shapes = []
        kernel = functools.partial(_centroid_kernel_single, compute_dtype=cdt)
        semantics = ("parallel", "parallel")
    else:
        grid = (n_grid, k_grid, c_grid)
        in_specs = [
            pl.BlockSpec((tile_n, tile_c), lambda i, j, c: (i, c)),
            pl.BlockSpec((tile_c, tile_k), lambda i, j, c: (c, j)),
        ]
        out_specs = pl.BlockSpec((tile_n, tile_k), lambda i, j, c: (i, j))
        scratch_shapes = [pltpu.VMEM((tile_n, tile_k), jnp.float32)]
        kernel = functools.partial(_centroid_kernel_reduce, compute_dtype=cdt)
        semantics = ("parallel", "parallel", "arbitrary")

    out = pl.pallas_call(
        kernel,
        out_shape=jax.ShapeDtypeStruct((N, k_pad), jnp.float32),
        grid=grid,
        in_specs=in_specs,
        out_specs=out_specs,
        scratch_shapes=scratch_shapes,
        compiler_params=pltpu.CompilerParams(
            dimension_semantics=semantics,
            vmem_limit_bytes=int(budget),
        ),
        cost_estimate=cost,
    )(x, c_t)

    return out if k_pad == K else out[:, :K]


def set_centroid(centroid: jax.Array) -> jax.Array:
    """Mirror of torch.nn.functional.normalize(centroid) (L2 over dim=1, eps=1e-12)."""
    norm = jnp.linalg.norm(centroid, axis=1, keepdims=True)
    return centroid / jnp.maximum(norm, 1e-12)


def set_centroid_by_features_and_targets(features: jax.Array, targets: jax.Array,
                                         num_classes: int) -> jax.Array:
    """Per-class mean of features, then L2-normalize each centroid (plain JAX setup)."""
    one_hot = jax.nn.one_hot(targets, num_classes, dtype=features.dtype)  # (N, K)
    sums = one_hot.T @ features                                           # (K, C)
    counts = one_hot.sum(axis=0)[:, None]                                 # (K, 1)
    centroids = sums / jnp.maximum(counts, 1.0)
    return set_centroid(centroids)


if __name__ == "__main__":
    key = jax.random.PRNGKey(0)
    k_feat, k_tgt, k_in = jax.random.split(key, 3)

    N_FIT, C, K, N = 64, 32, 4, 16

    # Deterministic synthetic "training" features/targets to build the centroids.
    fit_features = jax.random.normal(k_feat, (N_FIT, C), dtype=jnp.float32)
    fit_targets = jax.random.randint(k_tgt, (N_FIT,), 0, K)
    centroids = set_centroid_by_features_and_targets(fit_features, fit_targets, K)

    # Forward-pass inputs (N, C).
    inputs = jax.random.normal(k_in, (N, C), dtype=jnp.float32)

    out = centroid_forward(inputs, centroids)
    out = jax.block_until_ready(out)

    # Reference check (plain JAX, f32). Tolerance loosened for the bf16 MXU operands;
    # accumulation inside the kernel is f32.
    ref = inputs @ centroids.T
    assert out.shape == (N, K)
    assert jnp.allclose(out, ref, atol=5e-2, rtol=5e-2), float(jnp.max(jnp.abs(out - ref)))

    print("KERNEL_OK")
</pallas_src>

<mosaic_0001>
module attributes {stable_mosaic.version = 11 : i64} {
  func.func @_centroid_kernel_single(%arg0: i32, %arg1: i32, %arg2: memref<16x32xf32, #tpu.memory_space<vmem>>, %arg3: memref<32x128xbf16, #tpu.memory_space<vmem>>, %arg4: memref<16x128xf32, #tpu.memory_space<vmem>>) attributes {dimension_semantics = [#tpu.dimension_semantics<parallel>, #tpu.dimension_semantics<parallel>], iteration_bounds = array<i64: 1, 1>, scalar_prefetch = 0 : i64, scratch_operands = 0 : i64, tpu.core_type = #tpu.core_type<tc>, window_params = [{transform_indices = @transform_0, window_bounds = array<i64: 16, 32>}, {transform_indices = @transform_1, window_bounds = array<i64: 32, 128>}, {transform_indices = @transform_2, window_bounds = array<i64: 16, 128>}]} {
    %c0 = arith.constant 0 : index
    %c0_0 = arith.constant 0 : index
    %0 = vector.load %arg2[%c0, %c0_0] : memref<16x32xf32, #tpu.memory_space<vmem>>, vector<16x32xf32>
    %1 = arith.truncf %0 : vector<16x32xf32> to vector<16x32xbf16>
    %c0_1 = arith.constant 0 : index
    %c0_2 = arith.constant 0 : index
    %2 = vector.load %arg3[%c0_1, %c0_2] : memref<32x128xbf16, #tpu.memory_space<vmem>>, vector<32x128xbf16>
    %cst = arith.constant dense<0.000000e+00> : vector<16x128xf32>
    %3 = tpu.matmul %1, %2, %cst {dimension_numbers = #tpu.dot_dimension_numbers<[1], [0], [0], [1], [0, 0, 1, 1], [], []>} : vector<16x32xbf16>, vector<32x128xbf16>, vector<16x128xf32> -> vector<16x128xf32>
    %c0_3 = arith.constant 0 : index
    %c0_4 = arith.constant 0 : index
    %4 = vector.load %arg4[%c0_3, %c0_4] : memref<16x128xf32, #tpu.memory_space<vmem>>, vector<16x128xf32>
    tpu.vector_store %arg4[%c0_3, %c0_4], %3 {strides = array<i32>} : memref<16x128xf32, #tpu.memory_space<vmem>>, vector<16x128xf32>,
    return
  }
  func.func @transform_0(%arg0: i32, %arg1: i32) -> (i32, i32) {
    %c0_i32 = arith.constant 0 : i32
    %c0_i32_0 = arith.constant 0 : i32
    return %arg0, %c0_i32 : i32, i32
  }
  func.func @transform_1(%arg0: i32, %arg1: i32) -> (i32, i32) {
    %c0_i32 = arith.constant 0 : i32
    %c0_i32_0 = arith.constant 0 : i32
    return %c0_i32, %arg1 : i32, i32
  }
  func.func @transform_2(%arg0: i32, %arg1: i32) -> (i32, i32) {
    %c0_i32 = arith.constant 0 : i32
    return %arg0, %arg1 : i32, i32
  }
}

</mosaic_0001>

<bundles_post_ra>
// kernel: centroid_forward.1
= control target key start
LH: loop header
LB: loop body
LE: loop exit
PB: predicated region body
PF: predicated region fallthrough
CT: control target
= control target key end

     0   :  { %v100_v0 = vmov 0.0   ;;  %vm101_vm0 = vmmov 0   ;;  %vm31_vm1 = vcmask 261120   ;;  %s135_s1 = inlined_call_operand.vmem [shape: bf16[32,128], index: 1, kind: input, shape index: {}]   ;;  %s136_s0 = inlined_call_operand.vmem [shape: f32[16,32], index: 0, kind: input, shape index: {}]   ;;  %s137_s2 = inlined_call_operand.vmem [shape: f32[16,128], index: 2, kind: output, shape index: {}]  }
   0x1   :  { %88 = vmatprep.subr.bf16.mxu0 %v100_v0  ;;  %v98_v1 = vld [vmem:[%s135_s1 + $0x8] sm:$0xff]   ;;  %92 = vmatprep.mubr.msk.bf16.mxu0 %vm101_vm0, %v100_v0  ;;  %v99_v2 = vld [vmem:[%s135_s1] sm:$0xff]  }
   0x2   :  { %89 = vmatpush3.bf16.msra.mxu0 %v98_v1  ;;  %v12_v3 = vld [vmem:[%s136_s0] sm:$0xff]  ;;  %v13_v4 = vld [vmem:[%s136_s0 + $0x8] sm:$0xff] }
   0x3   :  { %90 = vmatprep.subr.bf16.mxu0 %v100_v0  ;;  %v14_v5 = vpack.c.bf16 %v13_v4, %v12_v3 }
   0x6   :  { %91 = vmatpush3.bf16.msra.mxu0 %v99_v2 }
   0x9   :  { %93 = vmatmul.mubr.msk.bf16.vlgmr.msra.gmra.mxu0 %vm31_vm1, %v14_v5 }
  0xc9   :  { %v69_v6 = vpop.f32.mrf.mxu0 }
  0xca   :  { %76 = vst [vmem:[%s137_s2] sm:$0xff] %v69_v6 }
  0xcb   :  { %v94_v7 = vpop.f32.mrf.mxu0 }
  0xcd   :  { %v72_v8 = vpop.f32.mrf.mxu0 }
  0xce   :  { %77 = vst [vmem:[%s137_s2 + $0x8] sm:$0xff] %v72_v8 }
  0xcf   :  { %v95_v9 = vpop.f32.mrf.mxu0 }

</bundles_post_ra>
